<compile_context>
chip_gen: v5e
topology: v5e:2x2
jax: 0.10.0
libtpu: 0.0.40
codegen_flags: <defaults>
</compile_context>

<pallas_src>
import functools
import math

import jax
import jax.numpy as jnp
from jax import lax
from jax.experimental import pallas as pl
from jax.experimental.pallas import tpu as pltpu

_SUBLANE = 8
_SUB_ROWS = 512                       # in-kernel sub-slab height (bounds live ranges)
_VMEM_TILE_BUDGET = 8 * 1024 * 1024   # conservative: fits v5e's 16 MiB scoped default


def _round_down(x, m):
    return (x // m) * m


def _qnet_kernel(*refs):
    """refs = (x_ref, w0, b0, w1, b1, ..., wL-1, bL-1, out_ref).

    Full MLP for one batch tile, entirely in VMEM. Matmuls accumulate in f32;
    bias add + ReLU run on the f32 accumulator. Big tiles are processed in
    _SUB_ROWS row sub-slabs so layer intermediates stay vreg/VMEM-friendly.
    """
    x_ref = refs[0]
    o_ref = refs[-1]
    param_refs = refs[1:-1]
    n_layers = len(param_refs) // 2
    tb = x_ref.shape[0]

    def mlp(x):
        h = x
        for l in range(n_layers):
            w = param_refs[2 * l][...]
            b = param_refs[2 * l + 1][...]                  # (1, out)
            lhs = h if h.dtype == w.dtype else h.astype(w.dtype)
            acc = jnp.dot(lhs, w, preferred_element_type=jnp.float32)
            b32 = b if b.dtype == jnp.float32 else b.astype(jnp.float32)
            h = acc + b32
            if l < n_layers - 1:                            # ReLU on all but last
                h = jnp.maximum(h, 0.0)
        return h

    if tb > _SUB_ROWS and tb % _SUB_ROWS == 0:
        n_sub = tb // _SUB_ROWS

        def body(i, carry):
            r0 = pl.multiple_of(i * _SUB_ROWS, _SUB_ROWS)
            rows = pl.ds(r0, _SUB_ROWS)
            o_ref[rows, :] = mlp(x_ref[rows, :]).astype(o_ref.dtype)
            return carry

        lax.fori_loop(0, n_sub, body, 0, unroll=(n_sub <= 4))
    else:
        o_ref[...] = mlp(x_ref[...]).astype(o_ref.dtype)


def init_qnetwork_params(key, obs_size, action_size, hid_layer=1,
                         start_end_dim=32, emb_dim=64, dtype=jnp.float32):
    """PyTorch-style uniform(+-1/sqrt(fan_in)) init.

    Returns a flat list [w0, b0, w1, b1, ...] with w stored as (in, out)
    (transposed vs torch's (out, in)) and b as (1, out), so y = x @ W + b.
    """
    dims = [obs_size, start_end_dim, emb_dim]
    dims += [emb_dim] * (hid_layer - 1)
    dims += [start_end_dim, action_size]

    params = []
    for i in range(len(dims) - 1):
        fan_in, fan_out = dims[i], dims[i + 1]
        key, kw, kb = jax.random.split(key, 3)
        bound = 1.0 / math.sqrt(fan_in)
        w = jax.random.uniform(kw, (fan_in, fan_out), dtype, -bound, bound)
        b = jax.random.uniform(kb, (1, fan_out), dtype, -bound, bound)
        params += [w, b]
    return params


@functools.partial(jax.jit, static_argnames=("action_size", "tile_b"))
def qnetwork_forward(x, params, *, action_size, tile_b=2048):
    """x: (B, ...) any trailing shape; flattened to (B, obs_size) like torch."""
    batch_size = x.shape[0]
    x2d = x.reshape(batch_size, -1)            # same row-major flatten as torch
    obs_size = x2d.shape[1]
    out_dtype = x2d.dtype
    itemsize = x2d.dtype.itemsize
    params = list(params)

    # ---- batch tile: VMEM-aware, multiple of 8 sublanes, NO HBM padding ----
    # Dominant VMEM user is the double-buffered (tb, obs_size) input tile.
    max_tb_vmem = max(_SUBLANE, _VMEM_TILE_BUDGET // (2 * obs_size * itemsize))
    tb = max(_SUBLANE, _round_down(min(tile_b, max_tb_vmem), _SUBLANE))
    if batch_size <= tb:
        tb = batch_size                        # single block; full dims always legal
    grid = (pl.cdiv(batch_size, tb),)          # trailing partial block handled by Pallas

    # Input/output tiles: full-extent (narrow) last dim — no lane padding in HBM.
    in_specs = [pl.BlockSpec((tb, obs_size), lambda i: (i, 0))]
    # Weights/biases: constant index_map -> VMEM-resident across grid steps.
    in_specs += [pl.BlockSpec(p.shape, lambda i: (0, 0)) for p in params]
    out_spec = pl.BlockSpec((tb, action_size), lambda i: (i, 0))
    out_shape = jax.ShapeDtypeStruct((batch_size, action_size), out_dtype)

    # ---- advisory cost estimate (real, unpadded shapes) ---------------------
    n_layers = len(params) // 2
    flops = sum(2 * batch_size * params[2 * l].shape[0] * params[2 * l].shape[1]
                for l in range(n_layers))
    bytes_accessed = (x2d.size * itemsize
                      + sum(p.size * p.dtype.itemsize for p in params)
                      + batch_size * action_size * itemsize)
    cost = pl.CostEstimate(flops=flops, transcendentals=0,
                           bytes_accessed=bytes_accessed)

    return pl.pallas_call(
        _qnet_kernel,
        out_shape=out_shape,
        grid_spec=pltpu.PrefetchScalarGridSpec(
            num_scalar_prefetch=0,
            grid=grid,
            in_specs=in_specs,
            out_specs=out_spec,
        ),
        compiler_params=pltpu.CompilerParams(
            dimension_semantics=("parallel",)),   # shards batch over 2 TCs on v7x
        cost_estimate=cost,
    )(x2d, *params)


def qnetwork_ref(x, params):
    """Pure-JAX reference for correctness check."""
    h = x.reshape(x.shape[0], -1).astype(jnp.float32)
    n_layers = len(params) // 2
    for l in range(n_layers):
        h = h @ params[2 * l].astype(jnp.float32) + params[2 * l + 1].astype(jnp.float32)
        if l < n_layers - 1:
            h = jnp.maximum(h, 0.0)
    return h


if __name__ == "__main__":
    key = jax.random.PRNGKey(0)

    # Small, module-consistent shapes: obs is (B, C, S) flattened to obs_size.
    B, C, S = 2, 4, 16          # obs_size = 64
    obs_size = C * S
    action_size = 6
    hid_layer = 1               # module default

    k_x, k_p, k_x2 = jax.random.split(key, 3)
    x = jax.random.normal(k_x, (B, C, S), dtype=jnp.float32)
    params = init_qnetwork_params(k_p, obs_size, action_size, hid_layer=hid_layer)

    out = qnetwork_forward(x, params, action_size=action_size)
    out = jax.block_until_ready(out)
    ref = qnetwork_ref(x, params)
    assert out.shape == (B, action_size), out.shape
    assert jnp.allclose(out, ref.astype(out.dtype), atol=1e-5, rtol=1e-5), (out, ref)

    # Secondary check: multi-tile grid + partial trailing block + in-kernel
    # sub-slab loop (tb=1024 -> two 512-row sub-slabs per tile).
    B2 = 1100
    x2 = jax.random.normal(k_x2, (B2, C, S), dtype=jnp.float32)
    out2 = qnetwork_forward(x2, params, action_size=action_size, tile_b=1024)
    out2 = jax.block_until_ready(out2)
    ref2 = qnetwork_ref(x2, params)
    assert out2.shape == (B2, action_size), out2.shape
    assert jnp.allclose(out2, ref2.astype(out2.dtype), atol=1e-4, rtol=1e-4)

    print("KERNEL_OK")
</pallas_src>

<mosaic_0001>
module attributes {stable_mosaic.version = 11 : i64} {
  func.func @_qnet_kernel(%arg0: i32, %arg1: memref<2x64xf32, #tpu.memory_space<vmem>>, %arg2: memref<64x32xf32, #tpu.memory_space<vmem>>, %arg3: memref<1x32xf32, #tpu.memory_space<vmem>>, %arg4: memref<32x64xf32, #tpu.memory_space<vmem>>, %arg5: memref<1x64xf32, #tpu.memory_space<vmem>>, %arg6: memref<64x32xf32, #tpu.memory_space<vmem>>, %arg7: memref<1x32xf32, #tpu.memory_space<vmem>>, %arg8: memref<32x6xf32, #tpu.memory_space<vmem>>, %arg9: memref<1x6xf32, #tpu.memory_space<vmem>>, %arg10: memref<2x6xf32, #tpu.memory_space<vmem>>) attributes {dimension_semantics = [#tpu.dimension_semantics<parallel>], iteration_bounds = array<i64: 1>, scalar_prefetch = 0 : i64, scratch_operands = 0 : i64, tpu.core_type = #tpu.core_type<tc>, window_params = [{transform_indices = @transform_0, window_bounds = array<i64: 2, 64>}, {pipeline_mode = #tpu.pipeline_mode<synchronous>, transform_indices = @transform_1, window_bounds = array<i64: 64, 32>}, {pipeline_mode = #tpu.pipeline_mode<synchronous>, transform_indices = @transform_2, window_bounds = array<i64: 1, 32>}, {pipeline_mode = #tpu.pipeline_mode<synchronous>, transform_indices = @transform_3, window_bounds = array<i64: 32, 64>}, {pipeline_mode = #tpu.pipeline_mode<synchronous>, transform_indices = @transform_4, window_bounds = array<i64: 1, 64>}, {pipeline_mode = #tpu.pipeline_mode<synchronous>, transform_indices = @transform_5, window_bounds = array<i64: 64, 32>}, {pipeline_mode = #tpu.pipeline_mode<synchronous>, transform_indices = @transform_6, window_bounds = array<i64: 1, 32>}, {pipeline_mode = #tpu.pipeline_mode<synchronous>, transform_indices = @transform_7, window_bounds = array<i64: 32, 6>}, {pipeline_mode = #tpu.pipeline_mode<synchronous>, transform_indices = @transform_8, window_bounds = array<i64: 1, 6>}, {transform_indices = @transform_9, window_bounds = array<i64: 2, 6>}]} {
    %c0 = arith.constant 0 : index
    %c0_0 = arith.constant 0 : index
    %0 = vector.load %arg1[%c0, %c0_0] : memref<2x64xf32, #tpu.memory_space<vmem>>, vector<2x64xf32>
    %c0_1 = arith.constant 0 : index
    %c0_2 = arith.constant 0 : index
    %1 = vector.load %arg2[%c0_1, %c0_2] : memref<64x32xf32, #tpu.memory_space<vmem>>, vector<64x32xf32>
    %c0_3 = arith.constant 0 : index
    %c0_4 = arith.constant 0 : index
    %2 = vector.load %arg3[%c0_3, %c0_4] : memref<1x32xf32, #tpu.memory_space<vmem>>, vector<1x32xf32>
    %cst = arith.constant dense<0.000000e+00> : vector<2x32xf32>
    %3 = tpu.matmul %0, %1, %cst {dimension_numbers = #tpu.dot_dimension_numbers<[1], [0], [0], [1], [0, 0, 1, 1], [], []>} : vector<2x64xf32>, vector<64x32xf32>, vector<2x32xf32> -> vector<2x32xf32>
    %4 = vector.broadcast %2 : vector<1x32xf32> to vector<2x32xf32>
    %5 = arith.addf %3, %4 : vector<2x32xf32>
    %cst_5 = arith.constant 0.000000e+00 : f32
    %6 = vector.broadcast %cst_5 : f32 to vector<2x32xf32>
    %7 = arith.maximumf %5, %6 : vector<2x32xf32>
    %c0_6 = arith.constant 0 : index
    %c0_7 = arith.constant 0 : index
    %8 = vector.load %arg4[%c0_6, %c0_7] : memref<32x64xf32, #tpu.memory_space<vmem>>, vector<32x64xf32>
    %c0_8 = arith.constant 0 : index
    %c0_9 = arith.constant 0 : index
    %9 = vector.load %arg5[%c0_8, %c0_9] : memref<1x64xf32, #tpu.memory_space<vmem>>, vector<1x64xf32>
    %cst_10 = arith.constant dense<0.000000e+00> : vector<2x64xf32>
    %10 = tpu.matmul %7, %8, %cst_10 {dimension_numbers = #tpu.dot_dimension_numbers<[1], [0], [0], [1], [0, 0, 1, 1], [], []>} : vector<2x32xf32>, vector<32x64xf32>, vector<2x64xf32> -> vector<2x64xf32>
    %11 = vector.broadcast %9 : vector<1x64xf32> to vector<2x64xf32>
    %12 = arith.addf %10, %11 : vector<2x64xf32>
    %cst_11 = arith.constant 0.000000e+00 : f32
    %13 = vector.broadcast %cst_11 : f32 to vector<2x64xf32>
    %14 = arith.maximumf %12, %13 : vector<2x64xf32>
    %c0_12 = arith.constant 0 : index
    %c0_13 = arith.constant 0 : index
    %15 = vector.load %arg6[%c0_12, %c0_13] : memref<64x32xf32, #tpu.memory_space<vmem>>, vector<64x32xf32>
    %c0_14 = arith.constant 0 : index
    %c0_15 = arith.constant 0 : index
    %16 = vector.load %arg7[%c0_14, %c0_15] : memref<1x32xf32, #tpu.memory_space<vmem>>, vector<1x32xf32>
    %cst_16 = arith.constant dense<0.000000e+00> : vector<2x32xf32>
    %17 = tpu.matmul %14, %15, %cst_16 {dimension_numbers = #tpu.dot_dimension_numbers<[1], [0], [0], [1], [0, 0, 1, 1], [], []>} : vector<2x64xf32>, vector<64x32xf32>, vector<2x32xf32> -> vector<2x32xf32>
    %18 = vector.broadcast %16 : vector<1x32xf32> to vector<2x32xf32>
    %19 = arith.addf %17, %18 : vector<2x32xf32>
    %cst_17 = arith.constant 0.000000e+00 : f32
    %20 = vector.broadcast %cst_17 : f32 to vector<2x32xf32>
    %21 = arith.maximumf %19, %20 : vector<2x32xf32>
    %c0_18 = arith.constant 0 : index
    %c0_19 = arith.constant 0 : index
    %22 = vector.load %arg8[%c0_18, %c0_19] : memref<32x6xf32, #tpu.memory_space<vmem>>, vector<32x6xf32>
    %c0_20 = arith.constant 0 : index
    %c0_21 = arith.constant 0 : index
    %23 = vector.load %arg9[%c0_20, %c0_21] : memref<1x6xf32, #tpu.memory_space<vmem>>, vector<1x6xf32>
    %cst_22 = arith.constant dense<0.000000e+00> : vector<2x6xf32>
    %24 = tpu.matmul %21, %22, %cst_22 {dimension_numbers = #tpu.dot_dimension_numbers<[1], [0], [0], [1], [0, 0, 1, 1], [], []>} : vector<2x32xf32>, vector<32x6xf32>, vector<2x6xf32> -> vector<2x6xf32>
    %25 = vector.broadcast %23 : vector<1x6xf32> to vector<2x6xf32>
    %26 = arith.addf %24, %25 : vector<2x6xf32>
    %c0_23 = arith.constant 0 : index
    %c0_24 = arith.constant 0 : index
    %27 = vector.load %arg10[%c0_23, %c0_24] : memref<2x6xf32, #tpu.memory_space<vmem>>, vector<2x6xf32>
    tpu.vector_store %arg10[%c0_23, %c0_24], %26 {strides = array<i32>} : memref<2x6xf32, #tpu.memory_space<vmem>>, vector<2x6xf32>,
    return
  }
  func.func @transform_0(%arg0: i32) -> (i32, i32) {
    %c0_i32 = arith.constant 0 : i32
    %c0_i32_0 = arith.constant 0 : i32
    return %arg0, %c0_i32 : i32, i32
  }
  func.func @transform_1(%arg0: i32) -> (i32, i32) {
    %c0_i32 = arith.constant 0 : i32
    %c0_i32_0 = arith.constant 0 : i32
    %c0_i32_1 = arith.constant 0 : i32
    return %c0_i32, %c0_i32_0 : i32, i32
  }
  func.func @transform_2(%arg0: i32) -> (i32, i32) {
    %c0_i32 = arith.constant 0 : i32
    %c0_i32_0 = arith.constant 0 : i32
    %c0_i32_1 = arith.constant 0 : i32
    return %c0_i32, %c0_i32_0 : i32, i32
  }
  func.func @transform_3(%arg0: i32) -> (i32, i32) {
    %c0_i32 = arith.constant 0 : i32
    %c0_i32_0 = arith.constant 0 : i32
    %c0_i32_1 = arith.constant 0 : i32
    return %c0_i32, %c0_i32_0 : i32, i32
  }
  func.func @transform_4(%arg0: i32) -> (i32, i32) {
    %c0_i32 = arith.constant 0 : i32
    %c0_i32_0 = arith.constant 0 : i32
    %c0_i32_1 = arith.constant 0 : i32
    return %c0_i32, %c0_i32_0 : i32, i32
  }
  func.func @transform_5(%arg0: i32) -> (i32, i32) {
    %c0_i32 = arith.constant 0 : i32
    %c0_i32_0 = arith.constant 0 : i32
    %c0_i32_1 = arith.constant 0 : i32
    return %c0_i32, %c0_i32_0 : i32, i32
  }
  func.func @transform_6(%arg0: i32) -> (i32, i32) {
    %c0_i32 = arith.constant 0 : i32
    %c0_i32_0 = arith.constant 0 : i32
    %c0_i32_1 = arith.constant 0 : i32
    return %c0_i32, %c0_i32_0 : i32, i32
  }
  func.func @transform_7(%arg0: i32) -> (i32, i32) {
    %c0_i32 = arith.constant 0 : i32
    %c0_i32_0 = arith.constant 0 : i32
    %c0_i32_1 = arith.constant 0 : i32
    return %c0_i32, %c0_i32_0 : i32, i32
  }
  func.func @transform_8(%arg0: i32) -> (i32, i32) {
    %c0_i32 = arith.constant 0 : i32
    %c0_i32_0 = arith.constant 0 : i32
    %c0_i32_1 = arith.constant 0 : i32
    return %c0_i32, %c0_i32_0 : i32, i32
  }
  func.func @transform_9(%arg0: i32) -> (i32, i32) {
    %c0_i32 = arith.constant 0 : i32
    %c0_i32_0 = arith.constant 0 : i32
    return %arg0, %c0_i32 : i32, i32
  }
}

</mosaic_0001>

<bundles_post_ra>
// kernel: qnetwork_forward.1
= control target key start
LH: loop header
LB: loop body
LE: loop exit
PB: predicated region body
PF: predicated region fallthrough
CT: control target
= control target key end

     0   :  { %s369_s0 = inlined_call_operand.vmem [shape: f32[2,64], index: 0, kind: input, shape index: {}]   ;;  %s370_s1 = inlined_call_operand.vmem [shape: f32[64,32], index: 1, kind: input, shape index: {}]   ;;  %s371_s2 = inlined_call_operand.vmem [shape: f32[1,32], index: 2, kind: input, shape index: {}]   ;;  %s372_s3 = inlined_call_operand.vmem [shape: f32[32,64], index: 3, kind: input, shape index: {}]   ;;  %s373_s4 = inlined_call_operand.vmem [shape: f32[1,64], index: 4, kind: input, shape index: {}]   ;;  %s374_s5 = inlined_call_operand.vmem [shape: f32[64,32], index: 5, kind: input, shape index: {}]   ;;  %s375_s6 = inlined_call_operand.vmem [shape: f32[1,32], index: 6, kind: input, shape index: {}]   ;;  %s376_s7 = inlined_call_operand.vmem [shape: f32[32,6], index: 7, kind: input, shape index: {}]   ;;  %s377_s8 = inlined_call_operand.vmem [shape: f32[1,6], index: 8, kind: input, shape index: {}]   ;;  %s378_s9 = inlined_call_operand.hbm [shape: f32[2,6], index: 9, kind: output, shape index: {}]  }
   0x1   :  { %v41_v0 = vld [vmem:[%s370_s1 + $0x38] sm:$0xff]  ;;  %v40_v1 = vld [vmem:[%s370_s1 + $0x30] sm:$0xff]  ;;  %v39_v2 = vld [vmem:[%s370_s1 + $0x28] sm:$0xff] }
   0x2   :  { %58 = vmatpush.msra.mxu0 %v41_v0  ;;  %v38_v3 = vld [vmem:[%s370_s1 + $0x20] sm:$0xff]  ;;  %v74_v4 = vld [vmem:[%s372_s3 + $0x18] sm:$0xff] }
   0x3   :  { %95 = vmatpush.msra.mxu1 %v74_v4 }
   0x4   :  { %59 = vmatpush.msra.mxu0 %v40_v1 }
   0x6   :  { %60 = vmatpush.msra.mxu0 %v39_v2 }
   0x7   :  { %14 = vsyncpa [#allocation3], 0  ;;  %v37_v5 = vld [vmem:[%s370_s1 + $0x18] sm:$0xff]  ;;  %v36_v6 = vld [vmem:[%s370_s1 + $0x10] sm:$0xff]  ;;  %vm46_vm0 = vcmask 523264   ;;  %vm79_vm1 = vcmask 261120  }
   0x8   :  { %61 = vmatpush.msra.mxu0 %v38_v3  ;;  %v35_v7 = vld [vmem:[%s370_s1 + $0x8] sm:$0xff]  ;;  %v34_v8 = vld [vmem:[%s370_s1] sm:$0xff]  ;;  %v73_v10 = vld [vmem:[%s372_s3 + $0x10] sm:$0xff]  ;;  %s224_s17 = smov [#allocation2]   ;;  %vm171_vm2 = vcmask 41984  }
   0x9   :  { %v33_v9 = vld [vmem:[%s369_s0] sm:$0x3]  ;;  %96 = vmatpush.msra.mxu1 %v73_v10  ;;  %v72_v11 = vld [vmem:[%s372_s3 + $0x8] sm:$0xff]  ;;  %v111_v13 = vld [vmem:[%s374_s5 + $0x38] sm:$0xff]  ;;  %s178_s18 = sshll.u32 %s224_s17, 4  ;;  %s179_s18 = int_to_ptr.vmem [resolvable:$true] %s178_s18 }
   0xa   :  { %62 = vmatpush.msra.mxu0 %v37_v5  ;;  %v71_v12 = vld [vmem:[%s372_s3] sm:$0xff]  ;;  %v110_v14 = vld [vmem:[%s374_s5 + $0x30] sm:$0xff]  ;;  %127 = vmatpush.msra.mxu2 %v111_v13  ;;  %v109_v15 = vld [vmem:[%s374_s5 + $0x28] sm:$0xff] }
   0xb   :  { %97 = vmatpush.msra.mxu1 %v72_v11  ;;  %v108_v16 = vld [vmem:[%s374_s5 + $0x20] sm:$0xff]  ;;  %v107_v17 = vld [vmem:[%s374_s5 + $0x18] sm:$0xff]  ;;  %v106_v22 = vld [vmem:[%s374_s5 + $0x10] sm:$0xff] }
   0xc   :  { %63 = vmatpush.msra.mxu0 %v36_v6  ;;  %128 = vmatpush.msra.mxu2 %v110_v14  ;;  %v194_v18 = vld [vmem:[%s371_s2] ss:$0 sm:$0xff]  ;;  %v105_v23 = vld [vmem:[%s374_s5 + $0x8] sm:$0xff]  ;;  %v143_v25 = vld [vmem:[%s376_s7 + $0x18] sm:$0xff] }
   0xd   :  { %98 = vmatpush.msra.mxu1 %v71_v12  ;;  %v104_v24 = vld [vmem:[%s374_s5] sm:$0xff]  ;;  %163 = vmatpush.msra.mxu3 %v143_v25  ;;  %v142_v30 = vld [vmem:[%s376_s7 + $0x10] sm:$0xff]  ;;  %v141_v31 = vld [vmem:[%s376_s7 + $0x8] sm:$0xff] }
   0xe   :  { %64 = vmatpush.msra.mxu0 %v35_v7  ;;  %129 = vmatpush.msra.mxu2 %v109_v15  ;;  %v195_v26 = vld [vmem:[%s373_s4] ss:$0 sm:$0xff] }
   0xf   :  { %164 = vmatpush.msra.mxu3 %v142_v30  ;;  %v140_v32 = vld [vmem:[%s376_s7] sm:$0xff]  ;;  %s180_s7 = sshll.u32 %s378_s9, 4  ;;  %s181_s7 = int_to_ptr.hbm [resolvable:$true] %s180_s7 }
  0x10   :  { %65 = vmatpush.msra.mxu0 %v34_v8  ;;  %130 = vmatpush.msra.mxu2 %v108_v16  ;;  %v196_v33 = vld [vmem:[%s375_s6] ss:$0 sm:$0xff] }
  0x11   :  { %189 = vmatmul.msk.f32.vlgmr.msra.gmra.mxu0 %vm46_vm0, %v33_v9  ;;  %165 = vmatpush.msra.mxu3 %v141_v31  ;;  %v197_v37 = vld [vmem:[%s377_s8] ss:$0 sm:$0xff] }
  0x12   :  { %131 = vmatpush.msra.mxu2 %v107_v17 }
  0x13   :  { %166 = vmatpush.msra.mxu3 %v140_v32 }
  0x14   :  { %132 = vmatpush.msra.mxu2 %v106_v22 }
  0x16   :  { %133 = vmatpush.msra.mxu2 %v105_v23 }
  0x18   :  { %134 = vmatpush.msra.mxu2 %v104_v24 }
  0x8e   :  { %v67_v19 = vpop.f32.mrf.mxu0 }
  0x8f   :  { %v68_v20 = vadd.f32 %v194_v18, %v67_v19 }
  0x91   :  { %v70_v21 = vmax.f32 %v68_v20, 0.0 }
  0x93   :  { %190 = vmatmul.msk.f32.vlgmr.msra.gmra.mxu1 %vm79_vm1, %v70_v21 }
 0x110   :  { %v100_v27 = vpop.f32.mrf.mxu1 }
 0x111   :  { %v101_v28 = vadd.f32 %v195_v26, %v100_v27 }
 0x113   :  { %v103_v29 = vmax.f32 %v101_v28, 0.0 }
 0x115   :  { %191 = vmatmul.msk.f32.vlgmr.msra.gmra.mxu2 %vm46_vm0, %v103_v29 }
 0x198   :  { %v136_v34 = vpop.f32.mrf.mxu2 }
 0x199   :  { %v137_v35 = vadd.f32 %v196_v33, %v136_v34 }
 0x19b   :  { %v139_v36 = vmax.f32 %v137_v35, 0.0 }
 0x19d   :  { %192 = vmatmul.msk.f32.vlgmr.msra.gmra.mxu3 %vm79_vm1, %v139_v36 }
 0x220   :  { %v168_v38 = vpop.f32.mrf.mxu3 }
 0x221   :  { %v169_v39 = vadd.f32 %v197_v37, %v168_v38 }
 0x223   :  { %172 = vst.msk [vmem:[#allocation2] sm:$0x3] %vm171_vm2, %v169_v39 }
 0x224   :  { %183 = dma.vmem_to_hbm [thread:$0]  %s179_s18, 32, %s181_s7, [#allocation3]  }
 0x225   :  { %222 = dma.done.wait [#allocation3], 32  }
 0x226   :  { %223 = vsyncadd [#allocation3], 4294967264 }
 0x227   :  { %188 = vsyncpa [#allocation3], 1 }

</bundles_post_ra>
